<compile_context>
chip_gen: v5e
topology: v5e:2x2
jax: 0.10.0
libtpu: 0.0.40
codegen_flags: <defaults>
</compile_context>

<pallas_src>
import math

import jax
import jax.numpy as jnp
from jax.experimental import pallas as pl
from jax.experimental.pallas import tpu as pltpu


def _round_up(v, m):
    return ((v + m - 1) // m) * m


def _vmem_capacity_bytes():
    try:
        return int(pltpu.get_tpu_info().vmem_capacity_bytes)
    except Exception:
        return 64 * 1024 * 1024  # assume the smallest (v7x per-TC) budget


def _sage_project_kernel(adj_ref, xn_ref, deg_ref, wl_ref, root_ref, o_ref, acc_ref):
    """One (row-block i, reduce-block k) grid step. Used when h_pad >= c_pad.

    adj_ref:  (TM, TK) bf16  unnormalized adjacency tile (A[i,k] = #edges k->i)
    xn_ref:   (TK, Cp) bf16  neighbor-node features for this K block
    deg_ref:  (TM, 1)  f32   in-degree (clamped >= 1) for this row block
    wl_ref:   (Cp, Hp) bf16  neighbor-branch weight, transposed (k-resident)
    root_ref: (TM, Hp) f32   precomputed x @ W_r^T + bias for this row block
    o_ref:    (TM, Hp) f32   output tile (resident across k)
    acc_ref:  (TM, Cp) f32   VMEM accumulator for A @ X (resident across k)
    """
    k = pl.program_id(1)

    @pl.when(k == 0)
    def _():
        acc_ref[...] = jnp.zeros_like(acc_ref)

    # Accumulate the aggregation matmul A @ X in f32 on the MXU.
    acc_ref[...] += jnp.dot(adj_ref[...], xn_ref[...],
                            preferred_element_type=jnp.float32)

    @pl.when(k == pl.num_programs(1) - 1)
    def _():
        # Mean normalization commutes with the W_l projection.  approx=True uses
        # the EUP vrcp (~2^-12 rel error) — negligible vs. the bf16 pipeline.
        inv_deg = pl.reciprocal(deg_ref[...], approx=True)
        agg = (acc_ref[...] * inv_deg).astype(wl_ref.dtype)        # (TM, Cp) bf16
        neigh = jnp.dot(agg, wl_ref[...], preferred_element_type=jnp.float32)
        o_ref[...] = (neigh + root_ref[...]).astype(o_ref.dtype)


def _sage_preprojected_kernel(adj_ref, yn_ref, deg_ref, root_ref, o_ref, acc_ref):
    """One (row-block i, reduce-block k) grid step when h_pad < c_pad.

    X was pre-projected in the wrapper (Y = X @ W_l^T), so the N^2-scaled stream,
    accumulator and per-step flops are h_pad wide instead of c_pad wide.
    """
    k = pl.program_id(1)

    @pl.when(k == 0)
    def _():
        acc_ref[...] = jnp.zeros_like(acc_ref)

    acc_ref[...] += jnp.dot(adj_ref[...], yn_ref[...],
                            preferred_element_type=jnp.float32)

    @pl.when(k == pl.num_programs(1) - 1)
    def _():
        inv_deg = pl.reciprocal(deg_ref[...], approx=True)
        o_ref[...] = (acc_ref[...] * inv_deg + root_ref[...]).astype(o_ref.dtype)


def graphsage_forward(x, edge_index, w_l, w_r, bias, *, tm=512, tk=None):
    """x: (N, C_in) f32, edge_index: (2, E) int32, w_*: (H, C_in), bias: (H,)."""
    n, c_in = x.shape
    h = w_l.shape[0]

    # Lane-dense padding: single 128-rounding of the feature / hidden dims.
    c_pad = _round_up(c_in, 128)
    h_pad = _round_up(h, 128)

    # Generation-aware tile / VMEM-limit choices.
    vmem_cap = _vmem_capacity_bytes()
    if tk is None:
        tk = 2048 if vmem_cap >= 128 * 1024 * 1024 else 1024
    vmem_limit = max(32 * 1024 * 1024,
                     min(int(vmem_cap * 0.85), 112 * 1024 * 1024))

    n128 = _round_up(n, 128)
    tm = min(tm, n128)
    tk = min(tk, n128)
    n_pad = _round_up(n128, tm * tk // math.gcd(tm, tk))

    src, dst = edge_index[0], edge_index[1]

    # Dense UNnormalized adjacency, built directly in bf16 (exact for small edge
    # multiplicities); in-degree via an O(E) scatter instead of an O(N^2) row sum.
    adj_b = jnp.zeros((n_pad, n_pad), jnp.bfloat16).at[dst, src].add(1.0)
    deg = jnp.maximum(
        jnp.zeros((n_pad, 1), jnp.float32).at[dst, 0].add(1.0), 1.0)

    # Root branch precomputed in XLA (O(N*C*H), negligible) and streamed as f32.
    root = jnp.zeros((n_pad, h_pad), jnp.float32).at[:n, :h].set(
        x @ w_r.T + bias)

    pre_project = h_pad < c_pad
    if pre_project:
        # Stream Y = X @ W_l^T (width h_pad); epilogue is just scale + add root.
        d_pad = h_pad
        stream = jnp.zeros((n_pad, h_pad), jnp.bfloat16).at[:n, :h].set(
            (x @ w_l.T).astype(jnp.bfloat16))
        kernel = _sage_preprojected_kernel
        extra_specs = []
        extra_args = ()
        flops = 2 * n_pad * n_pad * h_pad
        wl_bytes = 0
    else:
        # Stream X (width c_pad); project with the k-resident W_l^T in the epilogue.
        d_pad = c_pad
        stream = jnp.zeros((n_pad, c_pad), jnp.bfloat16).at[:n, :c_in].set(
            x.astype(jnp.bfloat16))
        wl_b = jnp.zeros((c_pad, h_pad), jnp.bfloat16).at[:c_in, :h].set(
            w_l.T.astype(jnp.bfloat16))
        kernel = _sage_project_kernel
        extra_specs = [pl.BlockSpec((c_pad, h_pad), lambda i, k: (0, 0))]  # W_l^T
        extra_args = (wl_b,)
        flops = 2 * n_pad * n_pad * c_pad + 2 * n_pad * c_pad * h_pad
        wl_bytes = 2 * c_pad * h_pad

    grid = (n_pad // tm, n_pad // tk)
    n_i = grid[0]

    in_specs = [
        pl.BlockSpec((tm, tk), lambda i, k: (i, k)),      # adjacency tile
        pl.BlockSpec((tk, d_pad), lambda i, k: (k, 0)),   # streamed node features
        pl.BlockSpec((tm, 1), lambda i, k: (i, 0)),       # in-degree
    ] + extra_specs + [
        pl.BlockSpec((tm, h_pad), lambda i, k: (i, 0)),   # precomputed root branch
    ]

    cost = pl.CostEstimate(
        flops=int(flops),
        transcendentals=int(n_pad),
        bytes_accessed=int(2 * n_pad * n_pad            # adjacency (bf16), once
                           + 2 * n_pad * d_pad * n_i    # streamed features per row-block
                           + wl_bytes                   # weight (resident)
                           + 4 * n_pad * h_pad          # root branch
                           + 4 * n_pad                  # deg
                           + 4 * n_pad * h_pad),        # output
    )

    out = pl.pallas_call(
        kernel,
        out_shape=jax.ShapeDtypeStruct((n_pad, h_pad), jnp.float32),
        grid_spec=pltpu.PrefetchScalarGridSpec(
            num_scalar_prefetch=0,
            grid=grid,
            in_specs=in_specs,
            out_specs=pl.BlockSpec((tm, h_pad), lambda i, k: (i, 0)),
            scratch_shapes=[pltpu.VMEM((tm, d_pad), jnp.float32)],
        ),
        compiler_params=pltpu.CompilerParams(
            dimension_semantics=("parallel", "arbitrary"),
            vmem_limit_bytes=vmem_limit,
        ),
        cost_estimate=cost,
    )(adj_b, stream, deg, *extra_args, root)

    return out[:n, :h]


if __name__ == "__main__":
    key = jax.random.PRNGKey(0)
    keys = jax.random.split(key, 10)

    def run_case(k_x, k_e, k_wl, k_wr, k_b, *, n, c_in, hid, e):
        x = jax.random.normal(k_x, (n, c_in), dtype=jnp.float32)
        edge_index = jax.random.randint(k_e, (2, e), 0, n, dtype=jnp.int32)
        # deterministic SAGEConv params: lin_l (neighbor) and lin_r (root, + bias)
        w_l = jax.random.normal(k_wl, (hid, c_in), dtype=jnp.float32) * 0.1
        w_r = jax.random.normal(k_wr, (hid, c_in), dtype=jnp.float32) * 0.1
        bias = jax.random.normal(k_b, (hid,), dtype=jnp.float32) * 0.1

        out = graphsage_forward(x, edge_index, w_l, w_r, bias)
        jax.block_until_ready(out)

        # Pure-JAX reference. Neighbor branch is bf16-roundtripped to mirror the
        # MXU inputs; root branch is exact f32 (as computed in the wrapper).
        xb = x.astype(jnp.bfloat16).astype(jnp.float32)
        wlb = w_l.astype(jnp.bfloat16).astype(jnp.float32)
        src, dst = edge_index[0], edge_index[1]
        adj = jnp.zeros((n, n), jnp.float32).at[dst, src].add(1.0)
        deg = jnp.maximum(adj.sum(1, keepdims=True), 1.0)
        ref = ((adj @ xb) / deg) @ wlb.T + x @ w_r.T + bias

        assert out.shape == (n, hid)
        err = float(jnp.max(jnp.abs(out - ref)))
        assert jnp.allclose(out, ref, atol=3e-2, rtol=3e-2), err

    # Case 1: H >= C_in -> epilogue-projection path (A @ X, then W_l in epilogue).
    run_case(*keys[0:5], n=16, c_in=16, hid=32, e=40)
    # Case 2: H < C_in  -> pre-projected path (A @ (X W_l^T)).
    run_case(*keys[5:10], n=16, c_in=256, hid=32, e=40)

    print("KERNEL_OK")
</pallas_src>

<mosaic_0001>
module attributes {stable_mosaic.version = 11 : i64} {
  func.func @_sage_project_kernel(%arg0: i32, %arg1: i32, %arg2: memref<128x128xbf16, #tpu.memory_space<vmem>>, %arg3: memref<128x128xbf16, #tpu.memory_space<vmem>>, %arg4: memref<128x1xf32, #tpu.memory_space<vmem>>, %arg5: memref<128x128xbf16, #tpu.memory_space<vmem>>, %arg6: memref<128x128xf32, #tpu.memory_space<vmem>>, %arg7: memref<128x128xf32, #tpu.memory_space<vmem>>, %arg8: memref<128x128xf32, #tpu.memory_space<vmem>>) attributes {dimension_semantics = [#tpu.dimension_semantics<parallel>, #tpu.dimension_semantics<arbitrary>], iteration_bounds = array<i64: 1, 1>, scalar_prefetch = 0 : i64, scratch_operands = 1 : i64, tpu.core_type = #tpu.core_type<tc>, window_params = [{transform_indices = @transform_0, window_bounds = array<i64: 128, 128>}, {transform_indices = @transform_1, window_bounds = array<i64: 128, 128>}, {transform_indices = @transform_2, window_bounds = array<i64: 128, 1>}, {pipeline_mode = #tpu.pipeline_mode<synchronous>, transform_indices = @transform_3, window_bounds = array<i64: 128, 128>}, {transform_indices = @transform_4, window_bounds = array<i64: 128, 128>}, {transform_indices = @transform_5, window_bounds = array<i64: 128, 128>}]} {
    %c0_i32 = arith.constant 0 : i32
    %0 = arith.cmpi eq, %arg1, %c0_i32 : i32
    %1 = arith.extui %0 : i1 to i32
    %c0_i32_0 = arith.constant 0 : i32
    %2 = arith.cmpi ne, %1, %c0_i32_0 : i32
    scf.if %2 {
      %cst_10 = arith.constant 0.000000e+00 : f32
      %12 = vector.broadcast %cst_10 : f32 to vector<128x128xf32>
      %c0_11 = arith.constant 0 : index
      %c0_12 = arith.constant 0 : index
      %13 = vector.load %arg8[%c0_11, %c0_12] : memref<128x128xf32, #tpu.memory_space<vmem>>, vector<128x128xf32>
      tpu.vector_store %arg8[%c0_11, %c0_12], %12 {strides = array<i32>} : memref<128x128xf32, #tpu.memory_space<vmem>>, vector<128x128xf32>,
    } else {
    }
    %c0 = arith.constant 0 : index
    %c0_1 = arith.constant 0 : index
    %3 = vector.load %arg8[%c0, %c0_1] : memref<128x128xf32, #tpu.memory_space<vmem>>, vector<128x128xf32>
    %c0_2 = arith.constant 0 : index
    %c0_3 = arith.constant 0 : index
    %4 = vector.load %arg2[%c0_2, %c0_3] : memref<128x128xbf16, #tpu.memory_space<vmem>>, vector<128x128xbf16>
    %c0_4 = arith.constant 0 : index
    %c0_5 = arith.constant 0 : index
    %5 = vector.load %arg3[%c0_4, %c0_5] : memref<128x128xbf16, #tpu.memory_space<vmem>>, vector<128x128xbf16>
    %cst = arith.constant dense<0.000000e+00> : vector<128x128xf32>
    %6 = tpu.matmul %4, %5, %cst {dimension_numbers = #tpu.dot_dimension_numbers<[1], [0], [0], [1], [0, 0, 1, 1], [], []>} : vector<128x128xbf16>, vector<128x128xbf16>, vector<128x128xf32> -> vector<128x128xf32>
    %7 = arith.addf %3, %6 : vector<128x128xf32>
    %c0_6 = arith.constant 0 : index
    %c0_7 = arith.constant 0 : index
    %8 = vector.load %arg8[%c0_6, %c0_7] : memref<128x128xf32, #tpu.memory_space<vmem>>, vector<128x128xf32>
    tpu.vector_store %arg8[%c0_6, %c0_7], %7 {strides = array<i32>} : memref<128x128xf32, #tpu.memory_space<vmem>>, vector<128x128xf32>,
    %c0_i32_8 = arith.constant 0 : i32
    %9 = arith.cmpi eq, %arg1, %c0_i32_8 : i32
    %10 = arith.extui %9 : i1 to i32
    %c0_i32_9 = arith.constant 0 : i32
    %11 = arith.cmpi ne, %10, %c0_i32_9 : i32
    scf.if %11 {
      %c0_10 = arith.constant 0 : index
      %c0_11 = arith.constant 0 : index
      %12 = vector.load %arg4[%c0_10, %c0_11] : memref<128x1xf32, #tpu.memory_space<vmem>>, vector<128x1xf32>
      %13 = tpu.reciprocal %12 {approx = true} : vector<128x1xf32> -> vector<128x1xf32>
      %c0_12 = arith.constant 0 : index
      %c0_13 = arith.constant 0 : index
      %14 = vector.load %arg8[%c0_12, %c0_13] : memref<128x128xf32, #tpu.memory_space<vmem>>, vector<128x128xf32>
      %15 = vector.broadcast %13 : vector<128x1xf32> to vector<128x128xf32>
      %16 = arith.mulf %14, %15 : vector<128x128xf32>
      %17 = arith.truncf %16 : vector<128x128xf32> to vector<128x128xbf16>
      %c0_14 = arith.constant 0 : index
      %c0_15 = arith.constant 0 : index
      %18 = vector.load %arg5[%c0_14, %c0_15] : memref<128x128xbf16, #tpu.memory_space<vmem>>, vector<128x128xbf16>
      %cst_16 = arith.constant dense<0.000000e+00> : vector<128x128xf32>
      %19 = tpu.matmul %17, %18, %cst_16 {dimension_numbers = #tpu.dot_dimension_numbers<[1], [0], [0], [1], [0, 0, 1, 1], [], []>} : vector<128x128xbf16>, vector<128x128xbf16>, vector<128x128xf32> -> vector<128x128xf32>
      %c0_17 = arith.constant 0 : index
      %c0_18 = arith.constant 0 : index
      %20 = vector.load %arg6[%c0_17, %c0_18] : memref<128x128xf32, #tpu.memory_space<vmem>>, vector<128x128xf32>
      %21 = arith.addf %19, %20 : vector<128x128xf32>
      %c0_19 = arith.constant 0 : index
      %c0_20 = arith.constant 0 : index
      %22 = vector.load %arg7[%c0_19, %c0_20] : memref<128x128xf32, #tpu.memory_space<vmem>>, vector<128x128xf32>
      tpu.vector_store %arg7[%c0_19, %c0_20], %21 {strides = array<i32>} : memref<128x128xf32, #tpu.memory_space<vmem>>, vector<128x128xf32>,
    } else {
    }
    return
  }
  func.func @transform_0(%arg0: i32, %arg1: i32) -> (i32, i32) {
    %c0_i32 = arith.constant 0 : i32
    return %arg0, %arg1 : i32, i32
  }
  func.func @transform_1(%arg0: i32, %arg1: i32) -> (i32, i32) {
    %c0_i32 = arith.constant 0 : i32
    %c0_i32_0 = arith.constant 0 : i32
    return %arg1, %c0_i32 : i32, i32
  }
  func.func @transform_2(%arg0: i32, %arg1: i32) -> (i32, i32) {
    %c0_i32 = arith.constant 0 : i32
    %c0_i32_0 = arith.constant 0 : i32
    return %arg0, %c0_i32 : i32, i32
  }
  func.func @transform_3(%arg0: i32, %arg1: i32) -> (i32, i32) {
    %c0_i32 = arith.constant 0 : i32
    %c0_i32_0 = arith.constant 0 : i32
    %c0_i32_1 = arith.constant 0 : i32
    return %c0_i32, %c0_i32_0 : i32, i32
  }
  func.func @transform_4(%arg0: i32, %arg1: i32) -> (i32, i32) {
    %c0_i32 = arith.constant 0 : i32
    %c0_i32_0 = arith.constant 0 : i32
    return %arg0, %c0_i32 : i32, i32
  }
  func.func @transform_5(%arg0: i32, %arg1: i32) -> (i32, i32) {
    %c0_i32 = arith.constant 0 : i32
    %c0_i32_0 = arith.constant 0 : i32
    return %arg0, %c0_i32 : i32, i32
  }
}

</mosaic_0001>

<bundles_post_ra>
// kernel: tpu_custom_call.1
= control target key start
LH: loop header
LB: loop body
LE: loop exit
PB: predicated region body
PF: predicated region fallthrough
CT: control target
= control target key end

     0   :  { %10 = vsyncpa [#allocation4], 0  ;;  %s1062_s0 = inlined_call_operand.hbm [shape: bf16[128,128], index: 0, kind: input, shape index: {}]   ;;  %s1063_s1 = inlined_call_operand.hbm [shape: bf16[128,128], index: 1, kind: input, shape index: {}]   ;;  %s1064_s2 = inlined_call_operand.vmem [shape: f32[128,1], index: 2, kind: input, shape index: {}]   ;;  %s1065_s3 = inlined_call_operand.hbm [shape: bf16[128,128], index: 3, kind: input, shape index: {}]   ;;  %s1066_s4 = inlined_call_operand.vmem [shape: f32[128,128], index: 4, kind: input, shape index: {}]   ;;  %s1067_s5 = inlined_call_operand.hbm [shape: f32[128,128], index: 5, kind: output, shape index: {}]  }
   0x1   :  { %11 = vsyncpa [#allocation7], 0 }
   0x2   :  { %12 = vsyncpa [#allocation5], 0  ;;  %s30_s20 = sshll.u32 %s1063_s1, 4  ;;  %s915_s21 = smov [#allocation6]   ;;  %s31_s20 = int_to_ptr.hbm [resolvable:$true] %s30_s20 }
   0x3   :  { %s32_s22 = sshll.u32 %s915_s21, 4  ;;  %s17_s25 = sshll.u32 %s1062_s0, 4  ;;  %s33_s22 = int_to_ptr.vmem [resolvable:$true] %s32_s22  ;;  %s18_s25 = int_to_ptr.hbm [resolvable:$true] %s17_s25 }
   0x4   :  { %s916_s26 = smov 64   ;;  %s917_s27 = smov 4  }
   0x5   :  { %38 = dma.hbm_to_vmem [thread:$0]  %s31_s20, 1024, %s33_s22, [#allocation7], %s916_s26, %s916_s26, %s917_s27  }
   0x6   :  { %s918_s28 = smov [#allocation3]   ;;  %s45_s7 = sshll.u32 %s1065_s3, 4  ;;  %s46_s7 = int_to_ptr.hbm [resolvable:$true] %s45_s7 }
   0x7   :  { %s19_s29 = sshll.u32 %s918_s28, 4  ;;  %s919_s1 = smov [#allocation8]   ;;  %s20_s29 = int_to_ptr.vmem [resolvable:$true] %s19_s29 }
   0x8   :  { %25 = dma.hbm_to_vmem [thread:$0]  %s18_s25, 1024, %s20_s29, [#allocation4], %s916_s26, %s916_s26, %s917_s27  }
   0x9   :  { %s47_s8 = sshll.u32 %s919_s1, 4  ;;  %s48_s8 = int_to_ptr.vmem [resolvable:$true] %s47_s8 }
   0xa   :  { %53 = dma.hbm_to_vmem [thread:$0]  %s46_s7, 1024, %s48_s8, [#allocation7], %s916_s26, %s916_s26, %s917_s27  }
   0xb   :  { %909 = dma.done.wait [#allocation4], 1024  }
   0xc   :  { %910 = vsyncadd [#allocation4], 4294966272 }
   0xd   :  { %911 = dma.done.wait [#allocation7], 2048  }
   0xe   :  { %912 = vsyncadd [#allocation7], 4294965248  ;;  %v920_v0 = vmov 0   ;;  %v744_v1 = vld [vmem:[#allocation6 + $0x38] sm:$0xff]  ;;  %v324_v2 = vld [vmem:[%s1064_s2 + $0x40] sm:$0xff]  ;;  %s921_s11 = smov [#allocation9]  }
   0xf   :  { %778 = vset.pattern.permute.xlu0 %v920_v0  ;;  %779 = vset.pattern.permute.xlu1 %v920_v0  ;;  %781 = vrcp.f32 %v324_v2  ;;  %v743_v3 = vld [vmem:[#allocation6 + $0x30] sm:$0xff]  ;;  %v316_v4 = vld [vmem:[%s1064_s2] sm:$0xff]  ;;  %v325_v5 = vld [vmem:[%s1064_s2 + $0x48] sm:$0xff]  ;;  %s617_s12 = sshll.u32 %s921_s11, 4  ;;  %s619_s15 = sshll.u32 %s1067_s5, 4  ;;  %s618_s12 = int_to_ptr.vmem [resolvable:$true] %s617_s12  ;;  %s620_s15 = int_to_ptr.hbm [resolvable:$true] %s619_s15 }
  0x10   :  { %780 = vset.pattern.permute.xlu2 %v920_v0  ;;  %232 = vmatpush.bf16.msra.mxu0 %v744_v1  ;;  %783 = vrcp.f32 %v316_v4  ;;  %v742_v6 = vld [vmem:[#allocation6 + $0x28] sm:$0xff]  ;;  %v741_v10 = vld [vmem:[#allocation6 + $0x20] sm:$0xff]  ;;  %v318_v11 = vld [vmem:[%s1064_s2 + $0x10] sm:$0xff]  ;;  %s922_s18 = smov 128   ;;  %s923_s19 = smov 8  }
  0x11   :  { %753 = vmatpush.bf16.msra.mxu2 %v744_v1  ;;  %785 = vrcp.f32 %v325_v5  ;;  %v317_v8 = vld [vmem:[%s1064_s2 + $0x8] sm:$0xff]  ;;  %v740_v13 = vld [vmem:[#allocation6 + $0x18] sm:$0xff]  ;;  %v326_v16 = vld [vmem:[%s1064_s2 + $0x50] sm:$0xff] }
  0x12   :  { %787 = vrcp.f32 %v317_v8  ;;  %v319_v14 = vld [vmem:[%s1064_s2 + $0x18] sm:$0xff]  ;;  %v739_v17 = vld [vmem:[#allocation6 + $0x10] sm:$0xff]  ;;  %v329_v18 = vld [vmem:[%s1064_s2 + $0x68] sm:$0xff] }
  0x13   :  { %789 = vrcp.f32 %v318_v11  ;;  %v738_v20 = vld [vmem:[#allocation6 + $0x8] sm:$0xff]  ;;  %v320_v22 = vld [vmem:[%s1064_s2 + $0x20] sm:$0xff]  ;;  %v327_v25 = vld [vmem:[%s1064_s2 + $0x58] sm:$0xff] }
  0x14   :  { %233 = vmatpush.bf16.msra.mxu0 %v743_v3  ;;  %791 = vrcp.f32 %v319_v14  ;;  %v737_v24 = vld [vmem:[#allocation6] sm:$0xff]  ;;  %v330_v26 = vld [vmem:[%s1064_s2 + $0x70] sm:$0xff]  ;;  %v331_v30 = vld [vmem:[%s1064_s2 + $0x78] sm:$0xff] }
  0x15   :  { %754 = vmatpush.bf16.msra.mxu2 %v743_v3  ;;  %v782_v7 = vpop.eup %781  ;;  %793 = vrcp.f32 %v326_v16  ;;  %v729_v28 = vld [vmem:[#allocation3] sm:$0xff]  ;;  %v323_v34 = vld [vmem:[%s1064_s2 + $0x38] sm:$0xff]  ;;  %v321_v38 = vld [vmem:[%s1064_s2 + $0x28] sm:$0xff] }
  0x16   :  { %406 = vperm.xlu0 %778, %v782_v7   ;;  %v784_v9 = vpop.eup %783  ;;  %795 = vrcp.f32 %v329_v18  ;;  %v733_v29 = vld [vmem:[#allocation3 + $0x20] sm:$0xff]  ;;  %v730_v40 = vld [vmem:[#allocation3 + $0x8] sm:$0xff]  ;;  %v322_v43 = vld [vmem:[%s1064_s2 + $0x30] sm:$0xff] }
  0x17   :  { %366 = vperm.xlu1 %779, %v784_v9   ;;  %v786_v12 = vpop.eup %785  ;;  %797 = vrcp.f32 %v320_v22  ;;  %v328_v33 = vld [vmem:[%s1064_s2 + $0x60] sm:$0xff]  ;;  %v734_v41 = vld [vmem:[#allocation3 + $0x28] sm:$0xff]  ;;  %v731_v45 = vld [vmem:[#allocation3 + $0x10] sm:$0xff] }
  0x18   :  { %234 = vmatpush.bf16.msra.mxu0 %v742_v6  ;;  %v788_v15 = vpop.eup %787  ;;  %799 = vrcp.f32 %v327_v25  ;;  %v735_v46 = vld [vmem:[#allocation3 + $0x30] sm:$0xff]  ;;  %v732_v47 = vld [vmem:[#allocation3 + $0x18] sm:$0xff]  ;;  %v750_v51 = vld [vmem:[#allocation8 + $0x28] sm:$0xff] }
  0x19   :  { %755 = vmatpush.bf16.msra.mxu2 %v742_v6  ;;  %v790_v19 = vpop.eup %789  ;;  %801 = vrcp.f32 %v330_v26  ;;  %v736_v48 = vld [vmem:[#allocation3 + $0x38] sm:$0xff]  ;;  %v751_v50 = vld [vmem:[#allocation8 + $0x30] sm:$0xff]  ;;  %v749_v52 = vld [vmem:[#allocation8 + $0x20] sm:$0xff] }
  0x1a   :  { %v792_v21 = vpop.eup %791  ;;  %803 = vrcp.f32 %v331_v30  ;;  %v752_v49 = vld [vmem:[#allocation8 + $0x38] sm:$0xff]  ;;  %v747_v54 = vld [vmem:[#allocation8 + $0x10] sm:$0xff]  ;;  %v746_v55 = vld [vmem:[#allocation8 + $0x8] sm:$0xff] }
  0x1b   :  { %v794_v23 = vpop.eup %793  ;;  %805 = vrcp.f32 %v328_v33  ;;  %548 = vmatpush.bf16.msra.mxu1 %v752_v49  ;;  %761 = vmatpush.bf16.msra.mxu3 %v752_v49  ;;  %v748_v53 = vld [vmem:[#allocation8 + $0x18] sm:$0xff]  ;;  %v745_v56 = vld [vmem:[#allocation8] sm:$0xff] }
  0x1c   :  { %235 = vmatpush.bf16.msra.mxu0 %v741_v10  ;;  %416 = vperm.xlu2 %780, %v794_v23   ;;  %v796_v27 = vpop.eup %795  ;;  %807 = vrcp.f32 %v323_v34  ;;  %v484_v49 = vld [vmem:[%s1066_s4] sm:$0xff] }
  0x1d   :  { %756 = vmatpush.bf16.msra.mxu2 %v741_v10  ;;  %v798_v31 = vpop.eup %797  ;;  %809 = vrcp.f32 %v321_v38 }
  0x1e   :  { %411 = vperm.xlu0 %778, %v786_v12   ;;  %v800_v32 = vpop.eup %799  ;;  %811 = vrcp.f32 %v322_v43 }
  0x1f   :  { %371 = vperm.xlu1 %779, %v788_v15   ;;  %v802_v35 = vpop.eup %801  ;;  %549 = vmatpush.bf16.msra.mxu1 %v751_v50 }
  0x20   :  { %236 = vmatpush.bf16.msra.mxu0 %v740_v13  ;;  %v804_v36 = vpop.eup %803  ;;  %762 = vmatpush.bf16.msra.mxu3 %v751_v50 }
  0x21   :  { %757 = vmatpush.bf16.msra.mxu2 %v740_v13  ;;  %v806_v37 = vpop.eup %805 }
  0x22   :  { %v808_v39 = vpop.eup %807 }
  0x23   :  { %v810_v42 = vpop.eup %809  ;;  %550 = vmatpush.bf16.msra.mxu1 %v750_v51 }
  0x24   :  { %237 = vmatpush.bf16.msra.mxu0 %v739_v17  ;;  %421 = vperm.xlu2 %780, %v800_v32   ;;  %v812_v44 = vpop.eup %811 }
  0x25   :  { %758 = vmatpush.bf16.msra.mxu2 %v739_v17  ;;  %763 = vmatpush.bf16.msra.mxu3 %v750_v51 }
  0x26   :  { %376 = vperm.xlu0 %778, %v790_v19  }
  0x27   :  { %381 = vperm.xlu1 %779, %v792_v21   ;;  %551 = vmatpush.bf16.msra.mxu1 %v749_v52 }
  0x28   :  { %238 = vmatpush.bf16.msra.mxu0 %v738_v20 }
  0x29   :  { %759 = vmatpush.bf16.msra.mxu2 %v738_v20  ;;  %764 = vmatpush.bf16.msra.mxu3 %v749_v52  ;;  %v485_v52 = vld [vmem:[%s1066_s4 + $0x8] sm:$0xff] }
  0x2b   :  { %552 = vmatpush.bf16.msra.mxu1 %v748_v53 }
  0x2c   :  { %239 = vmatpush.bf16.msra.mxu0 %v737_v24  ;;  %426 = vperm.xlu2 %780, %v806_v37  }
  0x2d   :  { %760 = vmatpush.bf16.msra.mxu2 %v737_v24  ;;  %765 = vmatpush.bf16.msra.mxu3 %v748_v53 }
  0x2e   :  { %431 = vperm.xlu0 %778, %v796_v27  }
  0x2f   :  { %240 = vmatmul.bf16.vlgmr.msra.gmra.mxu0 %v729_v28  ;;  %386 = vperm.xlu1 %779, %v798_v31  }
  0x30   :  { %260 = vmatmul.bf16.vlgmr.msra.gmra.mxu2 %v733_v29  ;;  %553 = vmatpush.bf16.msra.mxu1 %v747_v54 }
  0x31   :  { %766 = vmatpush.bf16.msra.mxu3 %v747_v54 }
  0x34   :  { %391 = vperm.xlu2 %780, %v810_v42   ;;  %554 = vmatpush.bf16.msra.mxu1 %v746_v55 }
  0x35   :  { %767 = vmatpush.bf16.msra.mxu3 %v746_v55  ;;  %v492_v55 = vld [vmem:[%s1066_s4 + $0x40] sm:$0xff] }
  0x36   :  { %436 = vperm.xlu0 %778, %v802_v35  }
  0x37   :  { %441 = vperm.xlu1 %779, %v804_v36  }
  0x38   :  { %555 = vmatpush.bf16.msra.mxu1 %v745_v56 }
  0x39   :  { %768 = vmatpush.bf16.msra.mxu3 %v745_v56 }
  0x3c   :  { %396 = vperm.xlu2 %780, %v812_v44  }
  0x3e   :  { %401 = vperm.xlu0 %778, %v808_v39  }
  0x3f   :  { %245 = vmatmul.bf16.gmra.mxu0 %v730_v40 }
  0x40   :  { %265 = vmatmul.bf16.gmra.mxu2 %v734_v41 }
  0x4f   :  { %250 = vmatmul.bf16.gmra.mxu0 %v731_v45 }
  0x50   :  { %270 = vmatmul.bf16.gmra.mxu2 %v735_v46 }
  0x5f   :  { %255 = vmatmul.bf16.gmra.mxu0 %v732_v47 }
  0x60   :  { %275 = vmatmul.bf16.gmra.mxu2 %v736_v48 }
  0x76   :  { %v417_v0 = vpop.permute.xlu2 %416 }
  0x7e   :  { %v422_v9 = vpop.permute.xlu2 %421 }
  0x86   :  { %v427_v17 = vpop.permute.xlu2 %426 }
  0x88   :  { %v407_v59 = vpop.permute.xlu0 %406 }
  0x89   :  { %v367_v57 = vpop.permute.xlu1 %366 }
  0x8e   :  { %v392_v25 = vpop.permute.xlu2 %391 }
  0x90   :  { %v412_v3 = vpop.permute.xlu0 %411 }
  0x91   :  { %v372_v62 = vpop.permute.xlu1 %371 }
  0x96   :  { %v397_v38 = vpop.permute.xlu2 %396 }
  0x98   :  { %v377_v11 = vpop.permute.xlu0 %376 }
  0x99   :  { %v382_v12 = vpop.permute.xlu1 %381 }
  0xa0   :  { %v432_v23 = vpop.permute.xlu0 %431 }
  0xa1   :  { %v387_v26 = vpop.permute.xlu1 %386 }
  0xa8   :  { %v437_v31 = vpop.permute.xlu0 %436 }
  0xa9   :  { %v442_v44 = vpop.permute.xlu1 %441 }
  0xac   :  { %v241_v58 = vpop.f32.mrf.mxu0 }
  0xad   :  { %v444_v61 = vmul.f32 %v367_v57, %v241_v58  ;;  %v486_v58 = vld [vmem:[%s1066_s4 + $0x10] sm:$0xff] }
  0xb0   :  { %v402_v39 = vpop.permute.xlu0 %401 }
  0xb3   :  { %v261_v60 = vpop.f32.mrf.mxu2 }
  0xb4   :  { %v243_v63 = vpop.f32.mrf.mxu0  ;;  %v452_v5 = vmul.f32 %v407_v59, %v261_v60 }
  0xb5   :  { %v445_v1 = vmul.f32 %v372_v62, %v243_v63 }
  0xb7   :  { %v460_v2 = vpack.c.bf16 %v445_v1, %v444_v61  ;;  %v493_v61 = vld [vmem:[%s1066_s4 + $0x48] sm:$0xff] }
  0xb9   :  { %556 = vmatmul.bf16.vlgmr.msra.gmra.mxu1 %v460_v2 }
  0xbb   :  { %v263_v4 = vpop.f32.mrf.mxu2 }
  0xbc   :  { %v453_v6 = vmul.f32 %v412_v3, %v263_v4  ;;  %v246_v7 = vpop.f32.mrf.mxu0  ;;  %v494_v3 = vld [vmem:[%s1066_s4 + $0x50] sm:$0xff] }
  0xbd   :  { %v446_v14 = vmul.f32 %v377_v11, %v246_v7 }
  0xbe   :  { %v464_v8 = vpack.c.bf16 %v453_v6, %v452_v5  ;;  %v488_v6 = vld [vmem:[%s1066_s4 + $0x20] sm:$0xff] }
  0xc0   :  { %576 = vmatmul.bf16.vlgmr.msra.gmra.mxu3 %v464_v8 }
  0xc3   :  { %v266_v10 = vpop.f32.mrf.mxu2 }
  0xc4   :  { %v248_v13 = vpop.f32.mrf.mxu0  ;;  %v454_v19 = vmul.f32 %v417_v0, %v266_v10  ;;  %v487_v0 = vld [vmem:[%s1066_s4 + $0x18] sm:$0xff] }
  0xc5   :  { %v447_v15 = vmul.f32 %v382_v12, %v248_v13  ;;  %v489_v12 = vld [vmem:[%s1066_s4 + $0x28] sm:$0xff] }
  0xc7   :  { %v461_v16 = vpack.c.bf16 %v447_v15, %v446_v14  ;;  %v496_v15 = vld [vmem:[%s1066_s4 + $0x60] sm:$0xff] }
  0xc9   :  { %561 = vmatmul.bf16.gmra.mxu1 %v461_v16 }
  0xcb   :  { %v268_v18 = vpop.f32.mrf.mxu2 }
  0xcc   :  { %v455_v20 = vmul.f32 %v422_v9, %v268_v18  ;;  %v251_v21 = vpop.f32.mrf.mxu0  ;;  %v495_v9 = vld [vmem:[%s1066_s4 + $0x58] sm:$0xff]  ;;  %v490_v18 = vld [vmem:[%s1066_s4 + $0x30] sm:$0xff] }
  0xcd   :  { %v448_v28 = vmul.f32 %v387_v26, %v251_v21  ;;  %v497_v21 = vld [vmem:[%s1066_s4 + $0x68] sm:$0xff] }
  0xce   :  { %v465_v22 = vpack.c.bf16 %v455_v20, %v454_v19 }
  0xd0   :  { %581 = vmatmul.bf16.gmra.mxu3 %v465_v22 }
  0xd3   :  { %v271_v24 = vpop.f32.mrf.mxu2 }
  0xd4   :  { %v253_v27 = vpop.f32.mrf.mxu0  ;;  %v456_v33 = vmul.f32 %v427_v17, %v271_v24  ;;  %v491_v24 = vld [vmem:[%s1066_s4 + $0x38] sm:$0xff] }
  0xd5   :  { %v449_v29 = vmul.f32 %v392_v25, %v253_v27  ;;  %v498_v27 = vld [vmem:[%s1066_s4 + $0x70] sm:$0xff] }
  0xd7   :  { %v462_v30 = vpack.c.bf16 %v449_v29, %v448_v28 }
  0xd9   :  { %566 = vmatmul.bf16.gmra.mxu1 %v462_v30  ;;  %v499_v30 = vld [vmem:[%s1066_s4 + $0x78] sm:$0xff] }
  0xdb   :  { %v273_v32 = vpop.f32.mrf.mxu2 }
  0xdc   :  { %v457_v34 = vmul.f32 %v432_v23, %v273_v32  ;;  %v256_v35 = vpop.f32.mrf.mxu0 }
  0xdd   :  { %v450_v41 = vmul.f32 %v397_v38, %v256_v35 }
  0xde   :  { %v466_v36 = vpack.c.bf16 %v457_v34, %v456_v33 }
  0xe0   :  { %586 = vmatmul.bf16.gmra.mxu3 %v466_v36 }
  0xe3   :  { %v276_v37 = vpop.f32.mrf.mxu2 }
  0xe4   :  { %v258_v40 = vpop.f32.mrf.mxu0  ;;  %v458_v46 = vmul.f32 %v437_v31, %v276_v37 }
  0xe5   :  { %v451_v42 = vmul.f32 %v402_v39, %v258_v40 }
  0xe7   :  { %v463_v43 = vpack.c.bf16 %v451_v42, %v450_v41 }
  0xe9   :  { %571 = vmatmul.bf16.gmra.mxu1 %v463_v43 }
  0xeb   :  { %v278_v45 = vpop.f32.mrf.mxu2 }
  0xec   :  { %v459_v47 = vmul.f32 %v442_v44, %v278_v45 }
  0xee   :  { %v467_v48 = vpack.c.bf16 %v459_v47, %v458_v46 }
  0xf0   :  { %591 = vmatmul.bf16.gmra.mxu3 %v467_v48 }
 0x136   :  { %v557_v50 = vpop.f32.mrf.mxu1 }
 0x137   :  { %v558_v51 = vadd.f32 %v557_v50, %v484_v49 }
 0x139   :  { %597 = vst [vmem:[#allocation9] sm:$0xff] %v558_v51 }
 0x13e   :  { %v559_v53 = vpop.f32.mrf.mxu1 }
 0x13f   :  { %v560_v54 = vadd.f32 %v559_v53, %v485_v52 }
 0x141   :  { %598 = vst [vmem:[#allocation9 + $0x8] sm:$0xff] %v560_v54 }
 0x143   :  { %v577_v56 = vpop.f32.mrf.mxu3 }
 0x144   :  { %v578_v57 = vadd.f32 %v577_v56, %v492_v55 }
 0x146   :  { %605 = vst [vmem:[#allocation9 + $0x40] sm:$0xff] %v578_v57  ;;  %v562_v59 = vpop.f32.mrf.mxu1 }
 0x147   :  { %v563_v60 = vadd.f32 %v562_v59, %v486_v58 }
 0x149   :  { %599 = vst [vmem:[#allocation9 + $0x10] sm:$0xff] %v563_v60 }
 0x14b   :  { %v579_v62 = vpop.f32.mrf.mxu3 }
 0x14c   :  { %v580_v63 = vadd.f32 %v579_v62, %v493_v61 }
 0x14e   :  { %606 = vst [vmem:[#allocation9 + $0x48] sm:$0xff] %v580_v63  ;;  %v564_v1 = vpop.f32.mrf.mxu1 }
 0x14f   :  { %v565_v2 = vadd.f32 %v564_v1, %v487_v0 }
 0x151   :  { %600 = vst [vmem:[#allocation9 + $0x18] sm:$0xff] %v565_v2 }
 0x153   :  { %v582_v4 = vpop.f32.mrf.mxu3 }
 0x154   :  { %v583_v5 = vadd.f32 %v582_v4, %v494_v3 }
 0x156   :  { %607 = vst [vmem:[#allocation9 + $0x50] sm:$0xff] %v583_v5  ;;  %v567_v7 = vpop.f32.mrf.mxu1 }
 0x157   :  { %v568_v8 = vadd.f32 %v567_v7, %v488_v6 }
 0x159   :  { %601 = vst [vmem:[#allocation9 + $0x20] sm:$0xff] %v568_v8 }
 0x15b   :  { %v584_v10 = vpop.f32.mrf.mxu3 }
 0x15c   :  { %v585_v11 = vadd.f32 %v584_v10, %v495_v9 }
 0x15e   :  { %608 = vst [vmem:[#allocation9 + $0x58] sm:$0xff] %v585_v11  ;;  %v569_v13 = vpop.f32.mrf.mxu1 }
 0x15f   :  { %v570_v14 = vadd.f32 %v569_v13, %v489_v12 }
 0x161   :  { %602 = vst [vmem:[#allocation9 + $0x28] sm:$0xff] %v570_v14 }
 0x163   :  { %v587_v16 = vpop.f32.mrf.mxu3 }
 0x164   :  { %v588_v17 = vadd.f32 %v587_v16, %v496_v15 }
 0x166   :  { %609 = vst [vmem:[#allocation9 + $0x60] sm:$0xff] %v588_v17  ;;  %v572_v19 = vpop.f32.mrf.mxu1 }
 0x167   :  { %v573_v20 = vadd.f32 %v572_v19, %v490_v18 }
 0x169   :  { %603 = vst [vmem:[#allocation9 + $0x30] sm:$0xff] %v573_v20 }
 0x16b   :  { %v589_v22 = vpop.f32.mrf.mxu3 }
 0x16c   :  { %v590_v23 = vadd.f32 %v589_v22, %v497_v21 }
 0x16e   :  { %610 = vst [vmem:[#allocation9 + $0x68] sm:$0xff] %v590_v23  ;;  %v574_v25 = vpop.f32.mrf.mxu1 }
 0x16f   :  { %v575_v26 = vadd.f32 %v574_v25, %v491_v24 }
 0x171   :  { %604 = vst [vmem:[#allocation9 + $0x38] sm:$0xff] %v575_v26 }
 0x173   :  { %v592_v28 = vpop.f32.mrf.mxu3 }
 0x174   :  { %v593_v29 = vadd.f32 %v592_v28, %v498_v27 }
 0x176   :  { %611 = vst [vmem:[#allocation9 + $0x70] sm:$0xff] %v593_v29 }
 0x17b   :  { %v594_v31 = vpop.f32.mrf.mxu3 }
 0x17c   :  { %v595_v32 = vadd.f32 %v594_v31, %v499_v30 }
 0x17e   :  { %612 = vst [vmem:[#allocation9 + $0x78] sm:$0xff] %v595_v32 }
 0x17f   :  { %625 = dma.vmem_to_hbm [thread:$0]  %s618_s12, 2048, %s620_s15, [#allocation5], %s922_s18, %s922_s18, %s923_s19  }
 0x180   :  { %913 = dma.done.wait [#allocation5], 2048  }
 0x181   :  { %914 = vsyncadd [#allocation5], 4294965248 }
 0x182   :  { %630 = vsyncpa [#allocation4], 1 }
 0x183   :  { %631 = vsyncpa [#allocation7], 1 }
 0x184   :  { %632 = vsyncpa [#allocation5], 1 }

</bundles_post_ra>
